<compile_context>
chip_gen: v7x
topology: tpu7x:2x2x1
jax: 0.10.0
libtpu: 0.0.40
codegen_flags: <defaults>
</compile_context>

<pallas_src>
import functools
import math

import jax
import jax.numpy as jnp
from jax import lax
from jax.experimental import pallas as pl
from jax.experimental.pallas import tpu as pltpu


# ---------------------------------------------------------------------------
# VMEM budgeting / tile selection helpers
# ---------------------------------------------------------------------------
def _vmem_budget_bytes() -> int:
    """Conservative per-kernel VMEM budget, generation-aware when queryable."""
    cap = 64 * 1024 * 1024  # v7x physical VMEM; safe lower bound everywhere
    try:
        cap = int(pltpu.get_tpu_info().vmem_capacity_bytes)
    except Exception:
        pass
    return min(cap * 3 // 4, 100 * 1024 * 1024)


def _divisor_tiles(n, candidates):
    tiles = [c for c in candidates if c <= n and n % c == 0]
    return tiles if tiles else [n]


def _pick_linear_tiles(rows, din, dout, itemsize, budget):
    """Largest (tr, tn, tk) whose double-buffered footprint fits the budget."""
    trs = _divisor_tiles(rows, (512, 256, 128, 64, 32, 16, 8))
    tns = _divisor_tiles(dout, (512, 256, 128))
    tks = _divisor_tiles(din, (512, 256, 128))
    for tr in trs:
        for tn in tns:
            for tk in tks:
                foot = (2 * (tr * tk + tk * tn) * itemsize   # x, w (double-buffered)
                        + 2 * tr * tn * itemsize             # out (double-buffered)
                        + tr * tn * 4                        # f32 accumulator
                        + 2 * tn * 4)                        # bias
                if foot <= budget * 2 // 3:
                    return tr, tn, tk
    return trs[-1], tns[-1], tks[-1]


def _pick_attn_q_tile(sq, sk, n_heads, d_k, d_v, itemsize, attn_itemsize,
                      full_mask, budget):
    cands = _divisor_tiles(sq, (512, 256, 128, 64, 32, 16, 8))
    fixed = sk * n_heads * (d_k + d_v) * itemsize + sk * 4    # K, V blocks + mask row
    for tq in cands:
        per_q = (tq * n_heads * (d_k + d_v) * itemsize        # q block + ctx out
                 + n_heads * tq * sk * attn_itemsize)         # attn out block
        if full_mask:
            per_q += tq * sk * 4                              # (tq, Sk) mask block
        if 2 * (fixed + per_q) <= budget * 2 // 3:
            return tq
    return cands[-1]


# ---------------------------------------------------------------------------
# Linear / matmul kernels (Q, K, V projections and the output fc)
# ---------------------------------------------------------------------------
def _linear_kernel(x_ref, w_ref, o_ref, acc_ref):
    @pl.when(pl.program_id(2) == 0)
    def _init():
        acc_ref[...] = jnp.zeros_like(acc_ref)

    acc_ref[...] += jnp.dot(x_ref[...], w_ref[...],
                            preferred_element_type=jnp.float32)

    @pl.when(pl.program_id(2) == pl.num_programs(2) - 1)
    def _store():
        o_ref[...] = acc_ref[...].astype(o_ref.dtype)


def _linear_bias_kernel(x_ref, w_ref, b_ref, o_ref, acc_ref):
    @pl.when(pl.program_id(2) == 0)
    def _init():
        acc_ref[...] = jnp.zeros_like(acc_ref)

    acc_ref[...] += jnp.dot(x_ref[...], w_ref[...],
                            preferred_element_type=jnp.float32)

    @pl.when(pl.program_id(2) == pl.num_programs(2) - 1)
    def _store():
        o_ref[...] = (acc_ref[...] + b_ref[...]).astype(o_ref.dtype)


def linear(x, w_t, bias=None):
    """x:(R,Din) @ w_t:(Din,Dout) [+ bias(Dout,)] -> (R,Dout); row/N/K tiled."""
    R, Din = x.shape
    Dout = w_t.shape[1]
    budget = _vmem_budget_bytes()
    tr, tn, tk = _pick_linear_tiles(R, Din, Dout, x.dtype.itemsize, budget)
    grid = (pl.cdiv(R, tr), pl.cdiv(Dout, tn), pl.cdiv(Din, tk))

    x_spec = pl.BlockSpec((tr, tk), lambda i, j, k: (i, k))
    w_spec = pl.BlockSpec((tk, tn), lambda i, j, k: (k, j))
    o_spec = pl.BlockSpec((tr, tn), lambda i, j, k: (i, j))
    scratch = [pltpu.VMEM((tr, tn), jnp.float32)]
    cp = pltpu.CompilerParams(
        dimension_semantics=("parallel", "parallel", "arbitrary"),
        vmem_limit_bytes=budget)
    out_shape = jax.ShapeDtypeStruct((R, Dout), x.dtype)

    if bias is None:
        return pl.pallas_call(
            _linear_kernel, out_shape=out_shape,
            grid_spec=pltpu.PrefetchScalarGridSpec(
                num_scalar_prefetch=0, grid=grid,
                in_specs=[x_spec, w_spec], out_specs=o_spec,
                scratch_shapes=scratch),
            compiler_params=cp,
        )(x, w_t)

    b2 = bias.reshape(1, Dout)
    b_spec = pl.BlockSpec((1, tn), lambda i, j, k: (0, j))
    return pl.pallas_call(
        _linear_bias_kernel, out_shape=out_shape,
        grid_spec=pltpu.PrefetchScalarGridSpec(
            num_scalar_prefetch=0, grid=grid,
            in_specs=[x_spec, w_spec, b_spec], out_specs=o_spec,
            scratch_shapes=scratch),
        compiler_params=cp,
    )(x, w_t, b2)


# ---------------------------------------------------------------------------
# Scaled dot-product attention kernel (per batch, per q-tile; heads in-kernel)
# ---------------------------------------------------------------------------
def _attn_body(q_blk, k_blk, v_blk, mask_blk, ctx_ref, attn_ref, *,
               n_heads, d_k, d_v, scale):
    # q_blk: (tq, H*d_k)  k_blk: (Sk, H*d_k)  v_blk: (Sk, H*d_v)
    # mask_blk: (1, Sk) key-valid or (tq, Sk) full mask (1=keep, 0 -> -1e9) or None
    q_scaled = q_blk * scale                      # fold 1/sqrt(d_k) into small operand
    # TODO(synk): for very long Sk (>~2-4K) add flash-style Sk tiling with online
    # softmax to bound the live (tq, Sk) score tile on v7x's 64 MiB VMEM.
    for h in range(n_heads):
        qh = q_scaled[:, h * d_k:(h + 1) * d_k]
        kh = k_blk[:, h * d_k:(h + 1) * d_k]
        vh = v_blk[:, h * d_v:(h + 1) * d_v]
        s = lax.dot_general(qh, kh, dimension_numbers=(((1,), (1,)), ((), ())),
                            preferred_element_type=jnp.float32)          # (tq, Sk)
        if mask_blk is not None:
            s = jnp.where(mask_blk == 0, jnp.float32(-1e9), s)
        m = jnp.max(s, axis=-1, keepdims=True)
        p = jnp.exp(s - m)
        denom = jnp.sum(p, axis=-1, keepdims=True)
        attn = p * pl.reciprocal(denom, approx=False)   # exact: rows sum to 1
        attn_ref[0, h] = attn.astype(attn_ref.dtype)
        ctx = jnp.dot(attn.astype(vh.dtype), vh,        # prob in value dtype for MXU
                      preferred_element_type=jnp.float32)
        ctx_ref[0, :, h * d_v:(h + 1) * d_v] = ctx.astype(ctx_ref.dtype)


def _attn_kernel(q_ref, k_ref, v_ref, ctx_ref, attn_ref, *, n_heads, d_k, d_v, scale):
    _attn_body(q_ref[0], k_ref[0], v_ref[0], None, ctx_ref, attn_ref,
               n_heads=n_heads, d_k=d_k, d_v=d_v, scale=scale)


def _attn_kernel_masked(q_ref, k_ref, v_ref, m_ref, ctx_ref, attn_ref, *,
                        n_heads, d_k, d_v, scale):
    _attn_body(q_ref[0], k_ref[0], v_ref[0], m_ref[0], ctx_ref, attn_ref,
               n_heads=n_heads, d_k=d_k, d_v=d_v, scale=scale)


def scaled_dot_product_attention(qh, kh, vh, *, n_heads, d_k, d_v, mask=None):
    """qh:(B,Sq,H*d_k) kh:(B,Sk,H*d_k) vh:(B,Sk,H*d_v).
    mask: None | (B,Sk) key-valid | (B,Sq,Sk) full  (1=keep, 0=fill -1e9).
    Returns ctx:(B,Sq,H*d_v) and attn:(B,H,Sq,Sk) (attn in qh.dtype)."""
    B, Sq, _ = qh.shape
    Sk = kh.shape[1]
    scale = 1.0 / math.sqrt(d_k)
    budget = _vmem_budget_bytes()
    attn_dtype = qh.dtype        # bf16 attn writeback when inputs are bf16
    full_mask = mask is not None and mask.ndim == 3
    tq = _pick_attn_q_tile(Sq, Sk, n_heads, d_k, d_v, qh.dtype.itemsize,
                           jnp.dtype(attn_dtype).itemsize, full_mask, budget)
    grid = (B, pl.cdiv(Sq, tq))

    q_spec = pl.BlockSpec((1, tq, n_heads * d_k), lambda b, qi: (b, qi, 0))
    k_spec = pl.BlockSpec((1, Sk, n_heads * d_k), lambda b, qi: (b, 0, 0))
    v_spec = pl.BlockSpec((1, Sk, n_heads * d_v), lambda b, qi: (b, 0, 0))
    ctx_spec = pl.BlockSpec((1, tq, n_heads * d_v), lambda b, qi: (b, qi, 0))
    attn_spec = pl.BlockSpec((1, n_heads, tq, Sk), lambda b, qi: (b, 0, qi, 0))

    out_shapes = (
        jax.ShapeDtypeStruct((B, Sq, n_heads * d_v), qh.dtype),
        jax.ShapeDtypeStruct((B, n_heads, Sq, Sk), attn_dtype),
    )
    cp = pltpu.CompilerParams(dimension_semantics=("parallel", "parallel"),
                              vmem_limit_bytes=budget)
    kw = dict(n_heads=n_heads, d_k=d_k, d_v=d_v, scale=scale)

    if mask is None:
        return pl.pallas_call(
            functools.partial(_attn_kernel, **kw),
            out_shape=out_shapes,
            grid_spec=pl.GridSpec(grid=grid, in_specs=[q_spec, k_spec, v_spec],
                                  out_specs=(ctx_spec, attn_spec)),
            compiler_params=cp,
        )(qh, kh, vh)

    if mask.ndim == 2:
        # Key-padding fast path: one (1, Sk) row per batch, broadcast in-kernel.
        m3 = mask.reshape(B, 1, Sk).astype(jnp.int32)
        m_spec = pl.BlockSpec((1, 1, Sk), lambda b, qi: (b, 0, 0))
    else:
        m3 = mask.astype(jnp.int32)
        m_spec = pl.BlockSpec((1, tq, Sk), lambda b, qi: (b, qi, 0))

    return pl.pallas_call(
        functools.partial(_attn_kernel_masked, **kw),
        out_shape=out_shapes,
        grid_spec=pl.GridSpec(grid=grid, in_specs=[q_spec, k_spec, v_spec, m_spec],
                              out_specs=(ctx_spec, attn_spec)),
        compiler_params=cp,
    )(qh, kh, vh, m3)


# ---------------------------------------------------------------------------
# Full MultiHeadAttention forward
# ---------------------------------------------------------------------------
def multi_head_attention(q_origin, k_origin, v_origin, params, *,
                         n_heads, d_k, d_v, mask=None):
    """Matches PyTorch MultiHeadAttention.forward at inference.
    params: wq_t/wk_t/wv_t (d_model, H*d), fc_w_t (H*d_v, d_model), fc_b (d_model,).
    mask: None | (B, Sk) key-valid | (B, Sq, Sk) full (1=keep, 0=fill -1e9).
    Returns (output (B, Sq, d_model), attn_scores (B, H, Sq, Sk))."""
    B, Sq, Dm = q_origin.shape
    Sk = k_origin.shape[1]

    if q_origin is k_origin and q_origin is v_origin:
        # Self-attention: fused QKV projection — read the activation once.
        w_qkv = jnp.concatenate(
            [params["wq_t"], params["wk_t"], params["wv_t"]], axis=1)
        qkv = linear(q_origin.reshape(B * Sq, Dm), w_qkv)
        qp = qkv[:, : n_heads * d_k]
        kp = qkv[:, n_heads * d_k: 2 * n_heads * d_k]
        vp = qkv[:, 2 * n_heads * d_k:]
    else:
        qp = linear(q_origin.reshape(B * Sq, Dm), params["wq_t"])   # (B*Sq, H*d_k)
        kp = linear(k_origin.reshape(B * Sk, Dm), params["wk_t"])   # (B*Sk, H*d_k)
        vp = linear(v_origin.reshape(B * Sk, Dm), params["wv_t"])   # (B*Sk, H*d_v)

    # Keep the (B, S, H*d) projection layout — heads are addressed in-kernel,
    # so no (B,S,H,d) -> (B,H,S,d) transposes (pure HBM layout traffic) remain.
    qh = qp.reshape(B, Sq, n_heads * d_k)
    kh = kp.reshape(B, Sk, n_heads * d_k)
    vh = vp.reshape(B, Sk, n_heads * d_v)

    ctx, attn = scaled_dot_product_attention(
        qh, kh, vh, n_heads=n_heads, d_k=d_k, d_v=d_v, mask=mask)

    # Head "concat" is already the (B, Sq, H*d_v) slab — a free reshape.
    out = linear(ctx.reshape(B * Sq, n_heads * d_v), params["fc_w_t"],
                 bias=params["fc_b"]).reshape(B, Sq, Dm)

    # TODO(synk): nn.Dropout on attn_scores and on the output is stochastic
    # training-time behavior; it is the identity at inference (implemented here).
    return out, attn


if __name__ == "__main__":
    n_heads, d_model, d_k, d_v = 4, 32, 8, 8
    batch, seq = 2, 8

    key = jax.random.PRNGKey(0)
    ks = jax.random.split(key, 8)
    q_in = jax.random.normal(ks[0], (batch, seq, d_model), jnp.float32)
    k_in = jax.random.normal(ks[1], (batch, seq, d_model), jnp.float32)
    v_in = jax.random.normal(ks[2], (batch, seq, d_model), jnp.float32)

    # torch nn.Linear layout: weight (out_features, in_features), y = x @ W^T
    wq = jax.random.normal(ks[3], (n_heads * d_k, d_model), jnp.float32) * 0.1
    wk = jax.random.normal(ks[4], (n_heads * d_k, d_model), jnp.float32) * 0.1
    wv = jax.random.normal(ks[5], (n_heads * d_v, d_model), jnp.float32) * 0.1
    fc_w = jax.random.normal(ks[6], (d_model, n_heads * d_v), jnp.float32) * 0.1
    fc_b = jax.random.normal(ks[7], (d_model,), jnp.float32) * 0.1

    # Key-padding mask: batch 0 sees all keys, batch 1 only the first 6.
    key_valid = jnp.array([[1] * seq, [1] * 6 + [0] * 2], dtype=jnp.int32)   # (B, Sk)
    mask3 = jnp.broadcast_to(key_valid[:, None, :], (batch, seq, seq)).astype(jnp.int32)

    params = dict(wq_t=wq.T, wk_t=wk.T, wv_t=wv.T, fc_w_t=fc_w.T, fc_b=fc_b)

    # Pure-JAX reference (dropout = identity).
    def ref_mha(q0, k0, v0):
        qp = q0 @ wq.T
        kp = k0 @ wk.T
        vp = v0 @ wv.T
        qhh = qp.reshape(batch, seq, n_heads, d_k).transpose(0, 2, 1, 3)
        khh = kp.reshape(batch, seq, n_heads, d_k).transpose(0, 2, 1, 3)
        vhh = vp.reshape(batch, seq, n_heads, d_v).transpose(0, 2, 1, 3)
        s = jnp.einsum("bhqd,bhkd->bhqk", qhh, khh) / jnp.sqrt(jnp.float32(d_k))
        s = jnp.where(mask3[:, None, :, :] == 0, jnp.float32(-1e9), s)
        a = jax.nn.softmax(s, axis=-1)
        cc = jnp.einsum("bhqk,bhkd->bhqd", a, vhh)
        cc = cc.transpose(0, 2, 1, 3).reshape(batch, seq, n_heads * d_v)
        return cc @ fc_w.T + fc_b, a

    # Cross-attention path: distinct q/k/v, key-valid (B, Sk) mask fast path.
    out, attn = multi_head_attention(q_in, k_in, v_in, params,
                                     n_heads=n_heads, d_k=d_k, d_v=d_v,
                                     mask=key_valid)
    out = jax.block_until_ready(out)
    attn = jax.block_until_ready(attn)
    ref_out, ref_attn = ref_mha(q_in, k_in, v_in)
    assert out.shape == (batch, seq, d_model)
    assert attn.shape == (batch, n_heads, seq, seq)
    assert jnp.allclose(out, ref_out, atol=2e-3, rtol=2e-3), "output mismatch vs reference"
    assert jnp.allclose(attn, ref_attn, atol=2e-3, rtol=2e-3), "attn mismatch vs reference"

    # Self-attention path: fused QKV projection + full (B, Sq, Sk) mask path.
    out2, attn2 = multi_head_attention(q_in, q_in, q_in, params,
                                       n_heads=n_heads, d_k=d_k, d_v=d_v,
                                       mask=mask3)
    out2 = jax.block_until_ready(out2)
    attn2 = jax.block_until_ready(attn2)
    ref_out2, ref_attn2 = ref_mha(q_in, q_in, q_in)
    assert jnp.allclose(out2, ref_out2, atol=2e-3, rtol=2e-3), "self-attn output mismatch"
    assert jnp.allclose(attn2, ref_attn2, atol=2e-3, rtol=2e-3), "self-attn attn mismatch"

    print("KERNEL_OK")
</pallas_src>

<mosaic_0001>
module attributes {stable_mosaic.version = 11 : i64} {
  func.func @_linear_kernel(%arg0: i32, %arg1: i32, %arg2: i32, %arg3: memref<16x32xf32, #tpu.memory_space<vmem>>, %arg4: memref<32x32xf32, #tpu.memory_space<vmem>>, %arg5: memref<16x32xf32, #tpu.memory_space<vmem>>, %arg6: memref<16x32xf32, #tpu.memory_space<vmem>>) attributes {dimension_semantics = [#tpu.dimension_semantics<parallel>, #tpu.dimension_semantics<parallel>, #tpu.dimension_semantics<arbitrary>], iteration_bounds = array<i64: 1, 1, 1>, scalar_prefetch = 0 : i64, scratch_operands = 1 : i64, tpu.core_type = #tpu.core_type<tc>, window_params = [{transform_indices = @transform_0, window_bounds = array<i64: 16, 32>}, {transform_indices = @transform_1, window_bounds = array<i64: 32, 32>}, {transform_indices = @transform_2, window_bounds = array<i64: 16, 32>}]} {
    %c0_i32 = arith.constant 0 : i32
    %0 = arith.cmpi eq, %arg2, %c0_i32 : i32
    %1 = arith.extui %0 : i1 to i32
    %c0_i32_0 = arith.constant 0 : i32
    %2 = arith.cmpi ne, %1, %c0_i32_0 : i32
    scf.if %2 {
      %cst_10 = arith.constant 0.000000e+00 : f32
      %12 = vector.broadcast %cst_10 : f32 to vector<16x32xf32>
      %c0_11 = arith.constant 0 : index
      %c0_12 = arith.constant 0 : index
      %13 = vector.load %arg6[%c0_11, %c0_12] : memref<16x32xf32, #tpu.memory_space<vmem>>, vector<16x32xf32>
      tpu.vector_store %arg6[%c0_11, %c0_12], %12 {strides = array<i32>} : memref<16x32xf32, #tpu.memory_space<vmem>>, vector<16x32xf32>,
    } else {
    }
    %c0 = arith.constant 0 : index
    %c0_1 = arith.constant 0 : index
    %3 = vector.load %arg6[%c0, %c0_1] : memref<16x32xf32, #tpu.memory_space<vmem>>, vector<16x32xf32>
    %c0_2 = arith.constant 0 : index
    %c0_3 = arith.constant 0 : index
    %4 = vector.load %arg3[%c0_2, %c0_3] : memref<16x32xf32, #tpu.memory_space<vmem>>, vector<16x32xf32>
    %c0_4 = arith.constant 0 : index
    %c0_5 = arith.constant 0 : index
    %5 = vector.load %arg4[%c0_4, %c0_5] : memref<32x32xf32, #tpu.memory_space<vmem>>, vector<32x32xf32>
    %cst = arith.constant dense<0.000000e+00> : vector<16x32xf32>
    %6 = tpu.matmul %4, %5, %cst {dimension_numbers = #tpu.dot_dimension_numbers<[1], [0], [0], [1], [0, 0, 1, 1], [], []>} : vector<16x32xf32>, vector<32x32xf32>, vector<16x32xf32> -> vector<16x32xf32>
    %7 = arith.addf %3, %6 : vector<16x32xf32>
    %c0_6 = arith.constant 0 : index
    %c0_7 = arith.constant 0 : index
    %8 = vector.load %arg6[%c0_6, %c0_7] : memref<16x32xf32, #tpu.memory_space<vmem>>, vector<16x32xf32>
    tpu.vector_store %arg6[%c0_6, %c0_7], %7 {strides = array<i32>} : memref<16x32xf32, #tpu.memory_space<vmem>>, vector<16x32xf32>,
    %c0_i32_8 = arith.constant 0 : i32
    %9 = arith.cmpi eq, %arg2, %c0_i32_8 : i32
    %10 = arith.extui %9 : i1 to i32
    %c0_i32_9 = arith.constant 0 : i32
    %11 = arith.cmpi ne, %10, %c0_i32_9 : i32
    scf.if %11 {
      %c0_10 = arith.constant 0 : index
      %c0_11 = arith.constant 0 : index
      %12 = vector.load %arg6[%c0_10, %c0_11] : memref<16x32xf32, #tpu.memory_space<vmem>>, vector<16x32xf32>
      %c0_12 = arith.constant 0 : index
      %c0_13 = arith.constant 0 : index
      %13 = vector.load %arg5[%c0_12, %c0_13] : memref<16x32xf32, #tpu.memory_space<vmem>>, vector<16x32xf32>
      tpu.vector_store %arg5[%c0_12, %c0_13], %12 {strides = array<i32>} : memref<16x32xf32, #tpu.memory_space<vmem>>, vector<16x32xf32>,
    } else {
    }
    return
  }
  func.func @transform_0(%arg0: i32, %arg1: i32, %arg2: i32) -> (i32, i32) {
    %c0_i32 = arith.constant 0 : i32
    return %arg0, %arg2 : i32, i32
  }
  func.func @transform_1(%arg0: i32, %arg1: i32, %arg2: i32) -> (i32, i32) {
    %c0_i32 = arith.constant 0 : i32
    return %arg2, %arg1 : i32, i32
  }
  func.func @transform_2(%arg0: i32, %arg1: i32, %arg2: i32) -> (i32, i32) {
    %c0_i32 = arith.constant 0 : i32
    return %arg0, %arg1 : i32, i32
  }
}

</mosaic_0001>

<bundles_post_ra>
// kernel: tpu_custom_call.1
= control target key start
LH: loop header
LB: loop body
LE: loop exit
PB: predicated region body
PF: predicated region fallthrough
CT: control target
= control target key end

     0   :  { %7 = vsyncpa [#allocation4], 0  ;;  %s345_s0 = inlined_call_operand.hbm [shape: f32[16,32], index: 0, kind: input, shape index: {}]   ;;  %s346_s1 = inlined_call_operand.hbm [shape: f32[32,32], index: 1, kind: input, shape index: {}]   ;;  %s347_s2 = inlined_call_operand.hbm [shape: f32[16,32], index: 2, kind: output, shape index: {}]  }
   0x1   :  { %8 = vsyncpa [#allocation7], 0 }
   0x2   :  { %9 = vsyncpa [#allocation5], 0  ;;  %s271_s9 = smov [#allocation3]   ;;  %s199_s13 = scalar_lea.hbm %s345_s0, 256 }
   0x3   :  { %s15_s10 = sshll.u32 %s271_s9, 4  ;;  %p200_p0 = scmp.ne.s32.totalorder %s345_s0, %s199_s13  ;;  %s16_s10 = int_to_ptr.vmem [resolvable:$true] %s15_s10 }
   0x4   :  { %p203_p1 = scmp.lt.u32.totalorder %s199_s13, %s345_s0 }
   0x6   :  { %p205_p2 = pnand %p203_p1, %p200_p0 }
   0x8   :  { %208 = shalt.err (!%p205_p2)
}
   0x9   :  { %s209_s18 = scalar_lea.vmem %s16_s10, 256  ;;  %p214_p4 = scmp.lt.s32.totalorder %s16_s10, %s16_s10 }
   0xa   :  { %p210_p3 = scmp.ne.s32.totalorder %s16_s10, %s209_s18  ;;  %p215_p5 = scmp.lt.s32.totalorder %s209_s18, %s209_s18 }
   0xc   :  { %p216_p6 = por %p215_p5, %p214_p4 }
   0xe   :  { %p217_p7 = pnand %p216_p6, %p210_p3 }
  0x10   :  { %220 = shalt.err (!%p217_p7)
}
  0x11   :  { %s272_s19 = smov 128   ;;  %s273_s20 = smov 8  }
  0x12   :  { %21 = dma.hbm_to_vmem [thread:$0]  %s345_s0, 256, %s16_s10, [#allocation4], %s272_s19, %s272_s19, %s273_s20  }
  0x13   :  { %s274_s23 = smov [#allocation6]   ;;  %s221_s27 = scalar_lea.hbm %s346_s1, 512 }
  0x14   :  { %s27_s24 = sshll.u32 %s274_s23, 4  ;;  %p222_p8 = scmp.ne.s32.totalorder %s346_s1, %s221_s27  ;;  %s28_s24 = int_to_ptr.vmem [resolvable:$true] %s27_s24 }
  0x15   :  { %p225_p9 = scmp.lt.u32.totalorder %s221_s27, %s346_s1 }
  0x17   :  { %p227_p10 = pnand %p225_p9, %p222_p8 }
  0x19   :  { %230 = shalt.err (!%p227_p10)
}
  0x1a   :  { %s231_s4 = scalar_lea.vmem %s28_s24, 512  ;;  %p236_p12 = scmp.lt.s32.totalorder %s28_s24, %s28_s24 }
  0x1b   :  { %p232_p11 = scmp.ne.s32.totalorder %s28_s24, %s231_s4  ;;  %p237_p13 = scmp.lt.s32.totalorder %s231_s4, %s231_s4 }
  0x1d   :  { %p238_p0 = por %p237_p13, %p236_p12 }
  0x1f   :  { %p239_p1 = pnand %p238_p0, %p232_p11 }
  0x21   :  { %242 = shalt.err (!%p239_p1)
}
  0x22   :  { %33 = dma.hbm_to_vmem [thread:$0]  %s346_s1, 512, %s28_s24, [#allocation7], %s272_s19, %s272_s19, %s273_s20  }
  0x23   :  { %265 = dma.done.wait [#allocation4], 256  }
  0x24   :  { %266 = vsyncadd [#allocation4], 4294967040 }
  0x25   :  { %267 = dma.done.wait [#allocation7], 512  }
  0x26   :  { %268 = vsyncadd [#allocation7], 4294966784  ;;  %vm44_vm0 = vcmask 261120   ;;  %v275_v0 = vmov 0.0   ;;  %v51_v1 = vld [vmem:[#allocation6] sm:$0xff]  ;;  %v52_v2 = vld [vmem:[#allocation6 + $0x8] sm:$0xff] }
  0x27   :  { %46 = vst.msk [vmem:[#allocation2 + $0x8] sm:$0xff] %vm44_vm0, %v275_v0  ;;  %45 = vst.msk [vmem:[#allocation2] sm:$0xff] %vm44_vm0, %v275_v0  ;;  %v53_v3 = vld [vmem:[#allocation6 + $0x10] sm:$0xff]  ;;  %v185_v4 = vpack.c.bf16 %v52_v2, %v51_v1  ;;  %v54_v5 = vld [vmem:[#allocation6 + $0x18] sm:$0xff]  ;;  %s276_s1 = smov [#allocation8]  }
  0x28   :  { %v49_v6 = vld [vmem:[#allocation3] sm:$0xff]  ;;  %v189_v7 = vpack.c.bf16 %v54_v5, %v53_v3  ;;  %v50_v8 = vld [vmem:[#allocation3 + $0x8] sm:$0xff]  ;;  %s153_s6 = sshll.u32 %s276_s1, 4  ;;  %s154_s6 = int_to_ptr.vmem [resolvable:$true] %s153_s6 }
  0x29   :  { %182 = vmatprep.mubr.msk.f32.mxu0 %vm44_vm0, %v49_v6  ;;  %186 = vmatprep.subr.bf16.mxu0 %v185_v4  ;;  %s243_s7 = scalar_lea.vmem %s154_s6, 256  ;;  %p248_p3 = scmp.lt.s32.totalorder %s154_s6, %s154_s6 }
  0x2a   :  { %188 = vmatpush3.bf16.msra.mxu0 %v185_v4  ;;  %p244_p2 = scmp.ne.s32.totalorder %s154_s6, %s243_s7  ;;  %p249_p4 = scmp.lt.s32.totalorder %s243_s7, %s243_s7 }
  0x2b   :  { %190 = vmatprep.subr.bf16.mxu0 %v189_v7 }
  0x2c   :  { %p250_p5 = por %p249_p4, %p248_p3 }
  0x2e   :  { %192 = vmatpush3.bf16.msra.mxu0 %v189_v7  ;;  %v48_v9 = vld [vmem:[#allocation2 + $0x8] sm:$0xff]  ;;  %v47_v10 = vld [vmem:[#allocation2] sm:$0xff]  ;;  %p251_p6 = pnand %p250_p5, %p244_p2 }
  0x31   :  { %183 = vmatmul.mubr.msk.f32.vlgmr.msra.gmra.mrb[0].mxu0 %vm44_vm0, %v50_v8 }
 0x104   :  { %v184_v11 = vpop.f32.mrb[0].mxu0 }
 0x105   :  { %v138_v12 = vadd.f32 %v184_v11, %v48_v9  ;;  %v128_v13 = vpop.f32.mrb[1].mxu0 }
 0x106   :  { %v137_v14 = vadd.f32 %v128_v13, %v47_v10 }
 0x107   :  { %140 = vst.msk [vmem:[#allocation2 + $0x8] sm:$0xff] %vm44_vm0, %v138_v12 }
 0x108   :  { %139 = vst.msk [vmem:[#allocation2] sm:$0xff] %vm44_vm0, %v137_v14 }
 0x10e   :  { %v145_v15 = vld [vmem:[#allocation2 + $0x8] sm:$0xff] }
 0x10f   :  { %v144_v16 = vld [vmem:[#allocation2] sm:$0xff]  ;;  %147 = vst.msk [vmem:[#allocation8 + $0x8] sm:$0xff] %vm44_vm0, %v145_v15 }
 0x110   :  { %146 = vst.msk [vmem:[#allocation8] sm:$0xff] %vm44_vm0, %v144_v16 }
 0x111   :  { %254 = shalt.err (!%p251_p6)
}
 0x112   :  { %s255_s10 = scalar_lea.hbm %s347_s2, 256 }
 0x113   :  { %p256_p7 = scmp.ne.s32.totalorder %s347_s2, %s255_s10  ;;  %p259_p8 = scmp.lt.u32.totalorder %s255_s10, %s347_s2 }
 0x115   :  { %p261_p9 = pnand %p259_p8, %p256_p7 }
 0x117   :  { %264 = shalt.err (!%p261_p9)
}
 0x118   :  { %159 = dma.vmem_to_hbm [thread:$0]  %s154_s6, 256, %s347_s2, [#allocation5], %s272_s19, %s272_s19, %s273_s20  }
 0x119   :  { %269 = dma.done.wait [#allocation5], 256  }
 0x11a   :  { %270 = vsyncadd [#allocation5], 4294967040 }
 0x11b   :  { %163 = vsyncpa [#allocation4], 1 }
 0x11c   :  { %164 = vsyncpa [#allocation7], 1 }
 0x11d   :  { %165 = vsyncpa [#allocation5], 1 }

</bundles_post_ra>
